<compile_context>
chip_gen: v7x
topology: tpu7x:2x2x1
jax: 0.10.0
libtpu: 0.0.40
codegen_flags: <defaults>
</compile_context>

<pallas_src>
import functools

import jax
import jax.numpy as jnp
from jax.experimental import pallas as pl
from jax.experimental.pallas import tpu as pltpu

LANE = 128


def _round_up(v, m):
    return ((v + m - 1) // m) * m


# ---------------------------------------------------------------------------
# Kernel 1: per-channel batch statistics (sum, sum of squares) over N and S.
#   x block        : (1, Cin, ts)  -- native layout, spatial on lanes
#   sum / sq block : (Cin, 1)      -- resident accumulators across the grid
# ---------------------------------------------------------------------------
def stats_kernel(x_ref, sum_ref, sq_ref):
    @pl.when(jnp.logical_and(pl.program_id(0) == 0, pl.program_id(1) == 0))
    def _():
        sum_ref[...] = jnp.zeros_like(sum_ref)
        sq_ref[...] = jnp.zeros_like(sq_ref)

    x = x_ref[0]                                          # (Cin, ts)
    sum_ref[...] += jnp.sum(x, axis=1, keepdims=True)
    sq_ref[...] += jnp.sum(x * x, axis=1, keepdims=True)


# ---------------------------------------------------------------------------
# Kernel 2: BN-folded transposed-conv matmul + bias.
#   x block : (1, Cin, ts)   -- Cin is the contraction axis (native layout)
#   w block : (C8, Cin)      -- BN-folded weights, resident in VMEM
#   b block : (C8, 1)        -- BN-folded bias
#   o block : (1, C8, ts)    -- lane dim = ts (multiple of 128) -> unmasked vst
# ---------------------------------------------------------------------------
def upconv_kernel(x_ref, w_ref, b_ref, o_ref):
    acc = jnp.dot(w_ref[...], x_ref[0],
                  preferred_element_type=jnp.float32)     # (C8, ts)
    o_ref[0] = (acc + b_ref[...]).astype(o_ref.dtype)


# ---------------------------------------------------------------------------
# Wrapper: layout bookkeeping + BN parameter folding (tiny XLA ops only).
# ---------------------------------------------------------------------------
@functools.partial(jax.jit, static_argnames=("eps",))
def upconv_forward(x, gamma, beta, w, b, eps=1e-5):
    N, Cin, D, H, W = x.shape
    Cout = w.shape[1]
    S = D * H * W
    M = N * S
    C8 = Cout * 8

    x3 = x.reshape(N, Cin, S).astype(jnp.float32)         # free reshape, no transpose

    # Spatial tile: lane-aligned, as large as a modest double-buffered VMEM
    # budget allows (covers v7x's smaller 64 MiB VMEM with plenty of headroom).
    ts = min(1024, _round_up(S, LANE))
    out_tile_budget = 16 * 1024 * 1024                    # bytes, for 2 output buffers
    ts_cap = max(LANE, (out_tile_budget // (2 * C8 * 4)) // LANE * LANE)
    ts = min(ts, ts_cap)
    S_pad = _round_up(S, ts)
    if S_pad != S:
        x3 = jnp.pad(x3, ((0, 0), (0, 0), (0, S_pad - S)))
    n_s = S_pad // ts

    # ---- batch statistics (zero-padded tail contributes 0 to both sums) ----
    s, sq = pl.pallas_call(
        stats_kernel,
        out_shape=(jax.ShapeDtypeStruct((Cin, 1), jnp.float32),
                   jax.ShapeDtypeStruct((Cin, 1), jnp.float32)),
        grid=(N, n_s),
        in_specs=[pl.BlockSpec((1, Cin, ts), lambda n, i: (n, 0, i))],
        out_specs=(pl.BlockSpec((Cin, 1), lambda n, i: (0, 0)),
                   pl.BlockSpec((Cin, 1), lambda n, i: (0, 0))),
        compiler_params=pltpu.CompilerParams(
            dimension_semantics=("arbitrary", "arbitrary"),
            vmem_limit_bytes=32 * 1024 * 1024),
    )(x3)

    mean = s[:, 0] / M
    # One-pass biased variance (BN training-mode statistics), computed in f32.
    var = jnp.maximum(sq[:, 0] / M - mean * mean, 0.0)
    scale = gamma.astype(jnp.float32) / jnp.sqrt(var + eps)
    shift = beta.astype(jnp.float32) - mean * scale

    # Fold BN into the ConvTranspose3d parameters (tiny tensors, plain XLA):
    #   out = W^T @ (scale*x + shift) + b  ==  (W^T * scale) @ x + (W^T @ shift + b)
    wf = w.reshape(Cin, C8).astype(jnp.float32)            # (Cin, Cout*8)
    bf = jnp.repeat(b.astype(jnp.float32), 8)               # (Cout*8,)
    w2 = wf.T * scale[None, :]                               # (C8, Cin)
    b2 = bf + wf.T @ shift                                   # (C8,)

    # ---- fused (BN-folded) transposed-conv matmul ----
    out3 = pl.pallas_call(
        upconv_kernel,
        out_shape=jax.ShapeDtypeStruct((N, C8, S_pad), jnp.float32),
        grid=(N, n_s),
        in_specs=[
            pl.BlockSpec((1, Cin, ts), lambda n, i: (n, 0, i)),
            pl.BlockSpec((C8, Cin), lambda n, i: (0, 0)),
            pl.BlockSpec((C8, 1), lambda n, i: (0, 0)),
        ],
        out_specs=pl.BlockSpec((1, C8, ts), lambda n, i: (n, 0, i)),
        compiler_params=pltpu.CompilerParams(
            dimension_semantics=("parallel", "parallel"),
            vmem_limit_bytes=32 * 1024 * 1024),
    )(x3, w2, b2[:, None])

    # (N, Cout*8, S) -> (N, Cout, 2D, 2H, 2W): one fused XLA reshape/transpose.
    out = out3[:, :, :S].reshape(N, Cout, 2, 2, 2, D, H, W)
    out = jnp.transpose(out, (0, 1, 5, 2, 6, 3, 7, 4))
    return out.reshape(N, Cout, 2 * D, 2 * H, 2 * W)


if __name__ == "__main__":
    key = jax.random.PRNGKey(0)
    k_x, k_w, k_b, k_g, k_be = jax.random.split(key, 5)

    N, Cin, Cout = 2, 4, 16
    D = H = W = 8                       # S = 512 -> one lane-aligned spatial tile

    x = jax.random.normal(k_x, (N, Cin, D, H, W), dtype=jnp.float32)
    # ConvTranspose3d parameters: weight (Cin, Cout, 2, 2, 2), bias (Cout,)
    w = jax.random.normal(k_w, (Cin, Cout, 2, 2, 2), dtype=jnp.float32) * 0.1
    b = jax.random.normal(k_b, (Cout,), dtype=jnp.float32) * 0.1
    # BatchNorm3d affine parameters (random to exercise the affine path).
    gamma = 1.0 + 0.1 * jax.random.normal(k_g, (Cin,), dtype=jnp.float32)
    beta = 0.1 * jax.random.normal(k_be, (Cin,), dtype=jnp.float32)

    out = upconv_forward(x, gamma, beta, w, b)
    out = jax.block_until_ready(out)
    assert out.shape == (N, Cout, 2 * D, 2 * H, 2 * W)

    # Independent plain-JAX reference: BN (training mode) + ConvTranspose3d.
    xf = jnp.transpose(x, (0, 2, 3, 4, 1)).reshape(-1, Cin)
    mean = jnp.mean(xf, axis=0)
    var = jnp.mean((xf - mean) ** 2, axis=0)
    xn = (x - mean[None, :, None, None, None]) / jnp.sqrt(
        var[None, :, None, None, None] + 1e-5)
    xn = xn * gamma[None, :, None, None, None] + beta[None, :, None, None, None]
    y = jnp.einsum('nidhw,iojkl->nodjhkwl', xn, w)
    ref = (y.reshape(N, Cout, 2 * D, 2 * H, 2 * W)
           + b[None, :, None, None, None])
    assert jnp.allclose(out, ref, atol=1e-3, rtol=1e-3)

    print("KERNEL_OK")
</pallas_src>

<mosaic_0001>
module attributes {stable_mosaic.version = 11 : i64} {
  func.func @stats_kernel(%arg0: i32, %arg1: i32, %arg2: memref<1x4x512xf32, #tpu.memory_space<vmem>>, %arg3: memref<4x1xf32, #tpu.memory_space<vmem>>, %arg4: memref<4x1xf32, #tpu.memory_space<vmem>>) attributes {dimension_semantics = [#tpu.dimension_semantics<arbitrary>, #tpu.dimension_semantics<arbitrary>], iteration_bounds = array<i64: 2, 1>, scalar_prefetch = 0 : i64, scratch_operands = 0 : i64, tpu.core_type = #tpu.core_type<tc>, window_params = [{transform_indices = @transform_0, window_bounds = array<i64: 1, 4, 512>}, {pipeline_mode = #tpu.pipeline_mode<synchronous>, transform_indices = @transform_1, window_bounds = array<i64: 4, 1>}, {pipeline_mode = #tpu.pipeline_mode<synchronous>, transform_indices = @transform_2, window_bounds = array<i64: 4, 1>}]} {
    %c0_i32 = arith.constant 0 : i32
    %0 = arith.cmpi eq, %arg0, %c0_i32 : i32
    %c0_i32_0 = arith.constant 0 : i32
    %1 = arith.cmpi eq, %arg1, %c0_i32_0 : i32
    %2 = arith.andi %0, %1 : i1
    %3 = arith.extui %2 : i1 to i32
    %c0_i32_1 = arith.constant 0 : i32
    %4 = arith.cmpi ne, %3, %c0_i32_1 : i32
    scf.if %4 {
      %cst_13 = arith.constant 0.000000e+00 : f32
      %18 = vector.broadcast %cst_13 : f32 to vector<4x1xf32>
      %c0_14 = arith.constant 0 : index
      %c0_15 = arith.constant 0 : index
      %19 = vector.load %arg3[%c0_14, %c0_15] : memref<4x1xf32, #tpu.memory_space<vmem>>, vector<4x1xf32>
      tpu.vector_store %arg3[%c0_14, %c0_15], %18 {strides = array<i32>} : memref<4x1xf32, #tpu.memory_space<vmem>>, vector<4x1xf32>,
      %cst_16 = arith.constant 0.000000e+00 : f32
      %20 = vector.broadcast %cst_16 : f32 to vector<4x1xf32>
      %c0_17 = arith.constant 0 : index
      %c0_18 = arith.constant 0 : index
      %21 = vector.load %arg4[%c0_17, %c0_18] : memref<4x1xf32, #tpu.memory_space<vmem>>, vector<4x1xf32>
      tpu.vector_store %arg4[%c0_17, %c0_18], %20 {strides = array<i32>} : memref<4x1xf32, #tpu.memory_space<vmem>>, vector<4x1xf32>,
    } else {
    }
    %c0 = arith.constant 0 : index
    %c0_2 = arith.constant 0 : index
    %c0_3 = arith.constant 0 : index
    %5 = vector.load %arg2[%c0, %c0_2, %c0_3] : memref<1x4x512xf32, #tpu.memory_space<vmem>>, vector<1x4x512xf32>
    %6 = vector.shape_cast %5 : vector<1x4x512xf32> to vector<4x512xf32>
    %c0_4 = arith.constant 0 : index
    %c0_5 = arith.constant 0 : index
    %7 = vector.load %arg3[%c0_4, %c0_5] : memref<4x1xf32, #tpu.memory_space<vmem>>, vector<4x1xf32>
    %cst = arith.constant dense<0.000000e+00> : vector<4xf32>
    %8 = vector.multi_reduction <add>, %6, %cst [1] : vector<4x512xf32> to vector<4xf32>
    %9 = vector.shape_cast %8 : vector<4xf32> to vector<4x1xf32>
    %10 = arith.addf %7, %9 : vector<4x1xf32>
    %c0_6 = arith.constant 0 : index
    %c0_7 = arith.constant 0 : index
    %11 = vector.load %arg3[%c0_6, %c0_7] : memref<4x1xf32, #tpu.memory_space<vmem>>, vector<4x1xf32>
    tpu.vector_store %arg3[%c0_6, %c0_7], %10 {strides = array<i32>} : memref<4x1xf32, #tpu.memory_space<vmem>>, vector<4x1xf32>,
    %c0_8 = arith.constant 0 : index
    %c0_9 = arith.constant 0 : index
    %12 = vector.load %arg4[%c0_8, %c0_9] : memref<4x1xf32, #tpu.memory_space<vmem>>, vector<4x1xf32>
    %13 = arith.mulf %6, %6 : vector<4x512xf32>
    %cst_10 = arith.constant dense<0.000000e+00> : vector<4xf32>
    %14 = vector.multi_reduction <add>, %13, %cst_10 [1] : vector<4x512xf32> to vector<4xf32>
    %15 = vector.shape_cast %14 : vector<4xf32> to vector<4x1xf32>
    %16 = arith.addf %12, %15 : vector<4x1xf32>
    %c0_11 = arith.constant 0 : index
    %c0_12 = arith.constant 0 : index
    %17 = vector.load %arg4[%c0_11, %c0_12] : memref<4x1xf32, #tpu.memory_space<vmem>>, vector<4x1xf32>
    tpu.vector_store %arg4[%c0_11, %c0_12], %16 {strides = array<i32>} : memref<4x1xf32, #tpu.memory_space<vmem>>, vector<4x1xf32>,
    return
  }
  func.func @transform_0(%arg0: i32, %arg1: i32) -> (i32, i32, i32) {
    %c0_i32 = arith.constant 0 : i32
    %c0_i32_0 = arith.constant 0 : i32
    return %arg0, %c0_i32, %arg1 : i32, i32, i32
  }
  func.func @transform_1(%arg0: i32, %arg1: i32) -> (i32, i32) {
    %c0_i32 = arith.constant 0 : i32
    %c0_i32_0 = arith.constant 0 : i32
    %c0_i32_1 = arith.constant 0 : i32
    return %c0_i32, %c0_i32_0 : i32, i32
  }
  func.func @transform_2(%arg0: i32, %arg1: i32) -> (i32, i32) {
    %c0_i32 = arith.constant 0 : i32
    %c0_i32_0 = arith.constant 0 : i32
    %c0_i32_1 = arith.constant 0 : i32
    return %c0_i32, %c0_i32_0 : i32, i32
  }
}

module attributes {stable_mosaic.version = 11 : i64} {
  func.func @upconv_kernel(%arg0: i32, %arg1: i32, %arg2: memref<1x4x512xf32, #tpu.memory_space<vmem>>, %arg3: memref<128x4xf32, #tpu.memory_space<vmem>>, %arg4: memref<128x1xf32, #tpu.memory_space<vmem>>, %arg5: memref<1x128x512xf32, #tpu.memory_space<vmem>>) attributes {dimension_semantics = [#tpu.dimension_semantics<parallel>, #tpu.dimension_semantics<parallel>], iteration_bounds = array<i64: 2, 1>, scalar_prefetch = 0 : i64, scratch_operands = 0 : i64, tpu.core_type = #tpu.core_type<tc>, window_params = [{transform_indices = @transform_0, window_bounds = array<i64: 1, 4, 512>}, {pipeline_mode = #tpu.pipeline_mode<synchronous>, transform_indices = @transform_1, window_bounds = array<i64: 128, 4>}, {pipeline_mode = #tpu.pipeline_mode<synchronous>, transform_indices = @transform_2, window_bounds = array<i64: 128, 1>}, {transform_indices = @transform_3, window_bounds = array<i64: 1, 128, 512>}]} {
    %c0 = arith.constant 0 : index
    %c0_0 = arith.constant 0 : index
    %0 = vector.load %arg3[%c0, %c0_0] : memref<128x4xf32, #tpu.memory_space<vmem>>, vector<128x4xf32>
    %c0_1 = arith.constant 0 : index
    %c0_2 = arith.constant 0 : index
    %c0_3 = arith.constant 0 : index
    %1 = vector.load %arg2[%c0_1, %c0_2, %c0_3] : memref<1x4x512xf32, #tpu.memory_space<vmem>>, vector<1x4x512xf32>
    %2 = vector.shape_cast %1 : vector<1x4x512xf32> to vector<4x512xf32>
    %cst = arith.constant dense<0.000000e+00> : vector<128x512xf32>
    %3 = tpu.matmul %0, %2, %cst {dimension_numbers = #tpu.dot_dimension_numbers<[1], [0], [0], [1], [0, 0, 1, 1], [], []>} : vector<128x4xf32>, vector<4x512xf32>, vector<128x512xf32> -> vector<128x512xf32>
    %c0_4 = arith.constant 0 : index
    %c0_5 = arith.constant 0 : index
    %4 = vector.load %arg4[%c0_4, %c0_5] : memref<128x1xf32, #tpu.memory_space<vmem>>, vector<128x1xf32>
    %5 = vector.broadcast %4 : vector<128x1xf32> to vector<128x512xf32>
    %6 = arith.addf %3, %5 : vector<128x512xf32>
    %c0_6 = arith.constant 0 : index
    %c0_7 = arith.constant 0 : index
    %c0_8 = arith.constant 0 : index
    %7 = vector.load %arg5[%c0_6, %c0_7, %c0_8] : memref<1x128x512xf32, #tpu.memory_space<vmem>>, vector<1x128x512xf32>
    %8 = vector.shape_cast %7 : vector<1x128x512xf32> to vector<128x512xf32>
    %9 = vector.shape_cast %6 : vector<128x512xf32> to vector<1x128x512xf32>
    tpu.vector_store %arg5[%c0_6, %c0_7, %c0_8], %9 {strides = array<i32>} : memref<1x128x512xf32, #tpu.memory_space<vmem>>, vector<1x128x512xf32>,
    return
  }
  func.func @transform_0(%arg0: i32, %arg1: i32) -> (i32, i32, i32) {
    %c0_i32 = arith.constant 0 : i32
    %c0_i32_0 = arith.constant 0 : i32
    return %arg0, %c0_i32, %arg1 : i32, i32, i32
  }
  func.func @transform_1(%arg0: i32, %arg1: i32) -> (i32, i32) {
    %c0_i32 = arith.constant 0 : i32
    %c0_i32_0 = arith.constant 0 : i32
    %c0_i32_1 = arith.constant 0 : i32
    return %c0_i32, %c0_i32_0 : i32, i32
  }
  func.func @transform_2(%arg0: i32, %arg1: i32) -> (i32, i32) {
    %c0_i32 = arith.constant 0 : i32
    %c0_i32_0 = arith.constant 0 : i32
    %c0_i32_1 = arith.constant 0 : i32
    return %c0_i32, %c0_i32_0 : i32, i32
  }
  func.func @transform_3(%arg0: i32, %arg1: i32) -> (i32, i32, i32) {
    %c0_i32 = arith.constant 0 : i32
    %c0_i32_0 = arith.constant 0 : i32
    return %arg0, %c0_i32, %arg1 : i32, i32, i32
  }
}

</mosaic_0001>

<bundles_post_ra>
// kernel: upconv_forward.2
= control target key start
LH: loop header
LB: loop body
LE: loop exit
PB: predicated region body
PF: predicated region fallthrough
CT: control target
= control target key end

     0   :  { %s332_s9 = smov 0   ;;  %s334_s10 = smov 0   ;;  %s388_s0 = inlined_call_operand.vmem [shape: f32[2,4,512], index: 0, kind: input, shape index: {}]   ;;  %s389_s1 = inlined_call_operand.vmem [shape: f32[4,1], index: 1, kind: output, shape index: {0}]   ;;  %s390_s2 = inlined_call_operand.vmem [shape: f32[4,1], index: 2, kind: output, shape index: {1}]  }
   0x1   :  { %s336_s11 = smov 0  }
   0x2 LB: > { %s25_s12 = sadd.s32 1, %s310_s10  ;;  %p257_p0 = scmp.ge.s32.totalorder %s314_s11, 1  ;;  %s314_s11 = sphi %s336_s11, %s13_s11   ;;  %s310_s10 = sphi %s334_s10, %s392_s10   ;;  %s306_s9 = sphi %s332_s9, %s391_s9  }
   0x3   : > { %p27_p1 = scmp.ge.s32.totalorder %s25_s12, 2  ;;  %p124_p2 = scmp.lt.s32.totalorder %s314_s11, 3 }
   0x5   : > { %s394_s12 = smov (%p27_p1, %s25_s12), 0  ;;  %p125_p3 = pnand %p257_p0, %p124_p2 }
   0x6   : > { %p146_p4 = scmp.lt.s32.totalorder (!%p125_p3), %s306_s9, 1  ;;  %p155_p5 = scmp.eq.s32.totalorder (!%p125_p3), %s306_s9, 0 }
   0x7   : > { %128 = sbr.rel (%p125_p3) target bundleno = 180 (0xb4), region = 24 }
   0xe   : > { %s396_s9 = smov (!%p146_p4, %s306_s9), 1  ;;  %160 = sbr.rel (!%p155_p5) target bundleno = 21 (0x15), region = 28 }
   0xf   : > { %s263_s13 = sshll.u32 %s396_s9, 4  ;;  %vm161_vm0 = vcmask (%p155_p5), 3072   ;;  %v316_v0 = vmov (%p155_p5), 0.0  }
  0x10   : > { %s153_s16 = scalar_lea.vmem %s388_s0, %s263_s13  ;;  %162 = vst.msk [vmem:[%s389_s1] sm:$0xf] (%p155_p5), %vm161_vm0, %v316_v0  ;;  %163 = vst.msk [vmem:[%s390_s2] sm:$0xf] (%p155_p5), %vm161_vm0, %v316_v0 }
  0x15 PF: > { %v164_v1 = vld [vmem:[%s153_s16] sm:$0xff]  ;;  %v165_v2 = vld [vmem:[%s153_s16 + $0x8] sm:$0xff]  ;;  %vm173_vm1 = vcmask 1043456   ;;  %vm184_vm2 = vcmask 3072  }
  0x16   : > { %v169_v3 = vcombine.high %v164_v1, %v164_v1  ;;  %v170_v4 = vcombine.high %v165_v2, %v165_v2  ;;  %v174_v5 = vsel %vm173_vm1, %v164_v1, 0.0  ;;  %v187_v6 = vmul.f32 %v164_v1, %v164_v1 }
  0x17   : > { %v188_v7 = vmul.f32 %v165_v2, %v165_v2  ;;  %v177_v9 = vsel %vm173_vm1, %v165_v2, 0.0  ;;  %v166_v23 = vld [vmem:[%s389_s1] sm:$0xf] }
  0x18   : > { %v175_v8 = vsel %vm173_vm1, %v169_v3, 0.0  ;;  %v191_v11 = vcombine.high %v187_v6, %v187_v6  ;;  %v195_v13 = vsel %vm173_vm1, %v187_v6, 0.0  ;;  %v179_v14 = vsel %vm173_vm1, %v170_v4, 0.0  ;;  %v186_v26 = vld [vmem:[%s390_s2] sm:$0xf] }
  0x19   : > { %v176_v10 = vadd.f32 %v175_v8, %v174_v5  ;;  %v192_v12 = vcombine.high %v188_v7, %v188_v7  ;;  %v198_v17 = vsel %vm173_vm1, %v188_v7, 0.0 }
  0x1a   : > { %v196_v16 = vsel %vm173_vm1, %v191_v11, 0.0 }
  0x1b   : > { %v178_v15 = vadd.f32 %v177_v9, %v176_v10  ;;  %v197_v18 = vadd.f32 %v196_v16, %v195_v13  ;;  %v200_v20 = vsel %vm173_vm1, %v192_v12, 0.0 }
  0x1d   : > { %v180_v19 = vadd.f32 %v179_v14, %v178_v15  ;;  %v199_v21 = vadd.f32 %v198_v17, %v197_v18 }
  0x1f   : > { %181 = vadd.xlane.f32.xlu0 %v180_v19  ;;  %v201_v22 = vadd.f32 %v200_v20, %v199_v21 }
  0x23   : > { %202 = vadd.xlane.f32.xlu0 %v201_v22 }
  0xac   : > { %v182_v24 = vpop.xlane.xlu0 %181 }
  0xad   : > { %v183_v25 = vadd.f32 %v182_v24, %v166_v23 }
  0xaf   : > { %185 = vst.msk [vmem:[%s389_s1] sm:$0xf] %vm184_vm2, %v183_v25 }
  0xb0   : > { %v203_v27 = vpop.xlane.xlu0 %202 }
  0xb1   : > { %v204_v28 = vadd.f32 %v203_v27, %v186_v26 }
  0xb3   : > { %205 = vst.msk [vmem:[%s390_s2] sm:$0xf] %vm184_vm2, %v204_v28 }
  0xb4 PF: > { %s13_s11 = sadd.s32 1, %s314_s11   ;;  %s391_s9 = smov %s310_s10 }
  0xb5   : > { %p10_p6 = scmp.ge.s32.totalorder %s13_s11, 4   ;;  %s392_s10 = smov %s394_s12 }
  0xb7   :  { %12 = sbr.rel (!%p10_p6) target bundleno = 2 (0x2), region = 62 }

// kernel: upconv_forward.3
= control target key start
LH: loop header
LB: loop body
LE: loop exit
PB: predicated region body
PF: predicated region fallthrough
CT: control target
= control target key end

     0   :  { %s984_s12 = smov 0   ;;  %s986_s13 = smov 0   ;;  %s1247_s0 = inlined_call_operand.vmem [shape: f32[2,4,512], index: 0, kind: input, shape index: {}]   ;;  %s1248_s1 = inlined_call_operand.vmem [shape: f32[128,4], index: 1, kind: input, shape index: {}]   ;;  %s1249_s2 = inlined_call_operand.vmem [shape: f32[128,1], index: 2, kind: input, shape index: {}]   ;;  %s1250_s3 = inlined_call_operand.vmem [shape: f32[2,128,512], index: 3, kind: output, shape index: {}]  }
   0x1   :  { %s988_s14 = smov 0  }
   0x2 LB: > { %s25_s15 = sadd.s32 1, %s956_s13  ;;  %p863_p0 = scmp.ge.s32.totalorder %s960_s14, 1  ;;  %s960_s14 = sphi %s988_s14, %s13_s14   ;;  %s956_s13 = sphi %s986_s13, %s1252_s13   ;;  %s952_s12 = sphi %s984_s12, %s1251_s12  }
   0x3   : > { %p27_p1 = scmp.ge.s32.totalorder %s25_s15, 2  ;;  %p158_p2 = scmp.lt.s32.totalorder %s960_s14, 3 }
   0x5   : > { %s1254_s15 = smov (%p27_p1, %s25_s15), 0  ;;  %p159_p3 = pnand %p863_p0, %p158_p2 }
   0x6   : > { %p191_p4 = scmp.lt.s32.totalorder (!%p159_p3), %s952_s12, 1  ;;  %v962_v0 = vmov (!%p159_p3), 0.0   ;;  %v963_v1 = vmov (!%p159_p3), 0   ;;  %v228_v2 = vld [vmem:[%s1249_s2] sm:$0xff] (!%p159_p3)  ;;  %vm377_vm0 = vcmask (!%p159_p3), 1043456   ;;  %v230_v7 = vld [vmem:[%s1249_s2 + $0x10] sm:$0xff] (!%p159_p3) }
   0x7   : > { %162 = sbr.rel (%p159_p3) target bundleno = 298 (0x12a), region = 32  ;;  %450 = vmatprep.mubr.f32.mxu0 (!%p159_p3), %v962_v0  ;;  %611 = vmatprep.mubr.f32.mxu1 (!%p159_p3), %v962_v0  ;;  %v210_v8 = vld [vmem:[%s1248_s1] sm:$0xff] (!%p159_p3)  ;;  %vm328_vm1 = vcmask (!%p159_p3), 31744   ;;  %v229_v9 = vld [vmem:[%s1249_s2 + $0x8] sm:$0xff] (!%p159_p3)  ;;  %v231_v10 = vld [vmem:[%s1249_s2 + $0x18] sm:$0xff] (!%p159_p3) }
   0x8   : > { %934 = vset.pattern.permute.xlu0 (!%p159_p3), %v963_v1  ;;  %935 = vset.pattern.permute.xlu1 (!%p159_p3), %v963_v1  ;;  %v211_v11 = vld [vmem:[%s1248_s1 + $0x8] sm:$0xff] (!%p159_p3)  ;;  %v232_v13 = vld [vmem:[%s1249_s2 + $0x20] sm:$0xff] (!%p159_p3)  ;;  %v212_v14 = vld [vmem:[%s1248_s1 + $0x10] sm:$0xff] (!%p159_p3) }
   0x9   : > { %246 = vperm.xlu0 (!%p159_p3), %934, %v228_v2   ;;  %256 = vperm.xlu1 (!%p159_p3), %935, %v230_v7   ;;  %v233_v12 = vld [vmem:[%s1249_s2 + $0x28] sm:$0xff] (!%p159_p3)  ;;  %v235_v15 = vld [vmem:[%s1249_s2 + $0x38] sm:$0xff] (!%p159_p3)  ;;  %v234_v16 = vld [vmem:[%s1249_s2 + $0x30] sm:$0xff] (!%p159_p3) }
   0xa   : > { %v213_v17 = vld [vmem:[%s1248_s1 + $0x18] sm:$0xff] (!%p159_p3)  ;;  %v237_v18 = vld [vmem:[%s1249_s2 + $0x48] sm:$0xff] (!%p159_p3)  ;;  %v236_v19 = vld [vmem:[%s1249_s2 + $0x40] sm:$0xff] (!%p159_p3) }
   0xb   : > { %v214_v20 = vld [vmem:[%s1248_s1 + $0x20] sm:$0xff] (!%p159_p3)  ;;  %v239_v21 = vld [vmem:[%s1249_s2 + $0x58] sm:$0xff] (!%p159_p3)  ;;  %v238_v22 = vld [vmem:[%s1249_s2 + $0x50] sm:$0xff] (!%p159_p3) }
   0xc   : > { %v215_v23 = vld [vmem:[%s1248_s1 + $0x28] sm:$0xff] (!%p159_p3)  ;;  %v240_v25 = vld [vmem:[%s1249_s2 + $0x60] sm:$0xff] (!%p159_p3)  ;;  %v216_v26 = vld [vmem:[%s1248_s1 + $0x30] sm:$0xff] (!%p159_p3) }
   0xd   : > { %251 = vperm.xlu0 (!%p159_p3), %934, %v229_v9   ;;  %261 = vperm.xlu1 (!%p159_p3), %935, %v231_v10   ;;  %v241_v24 = vld [vmem:[%s1249_s2 + $0x68] sm:$0xff] (!%p159_p3)  ;;  %v243_v27 = vld [vmem:[%s1249_s2 + $0x78] sm:$0xff] (!%p159_p3)  ;;  %v242_v28 = vld [vmem:[%s1249_s2 + $0x70] sm:$0xff] (!%p159_p3) }
   0xe   : > { %s1256_s12 = smov (!%p191_p4, %s952_s12), 1  ;;  %v217_v29 = vld [vmem:[%s1248_s1 + $0x38] sm:$0xff]  ;;  %v218_v30 = vld [vmem:[%s1248_s1 + $0x40] sm:$0xff]  ;;  %v219_v31 = vld [vmem:[%s1248_s1 + $0x48] sm:$0xff] }
   0xf   : > { %s906_s16 = sshll.u32 %s1256_s12, 4  ;;  %v220_v32 = vld [vmem:[%s1248_s1 + $0x50] sm:$0xff]  ;;  %v221_v33 = vld [vmem:[%s1248_s1 + $0x58] sm:$0xff]  ;;  %v222_v34 = vld [vmem:[%s1248_s1 + $0x60] sm:$0xff]  ;;  %s907_s11 = sshll.u32 %s1256_s12, 9 }
  0x10   : > { %s198_s19 = scalar_lea.vmem %s1247_s0, %s906_s16  ;;  %v223_v35 = vld [vmem:[%s1248_s1 + $0x68] sm:$0xff]  ;;  %v224_v36 = vld [vmem:[%s1248_s1 + $0x70] sm:$0xff]  ;;  %v225_v37 = vld [vmem:[%s1248_s1 + $0x78] sm:$0xff]  ;;  %s1172_s18 = scalar_lea.vmem %s1250_s3, %s907_s11 }
  0x11   : > { %v226_v3 = vld [vmem:[%s198_s19] sm:$0xff]  ;;  %v227_v4 = vld [vmem:[%s198_s19 + $0x8] sm:$0xff]  ;;  %271 = vperm.xlu1 %935, %v233_v12   ;;  %266 = vperm.xlu0 %934, %v232_v13  }
  0x12   : > { %v326_v5 = vcombine.high %v226_v3, %v226_v3  ;;  %v327_v6 = vcombine.high %v227_v4, %v227_v4 }
  0x14   : > { %868 = vmatprep.subr.msk.mxu0 %vm377_vm0, %v326_v5  ;;  %886 = vmatprep.subr.msk.mxu1 %vm377_vm0, %v327_v6 }
  0x15   : > { %869 = vmatpush1.msk.msra.mxu0 %vm377_vm0, %v226_v3  ;;  %887 = vmatpush1.msk.msra.mxu1 %vm377_vm0, %v227_v4 }
  0x16   : > { %870 = vmatmul.mubr.msk.f32.vlgmr.msra.gmra.mrb[0].mxu0 %vm328_vm1, %v210_v8  ;;  %888 = vmatmul.mubr.msk.f32.vlgmr.msra.gmra.mrb[0].mxu1 %vm328_vm1, %v210_v8 }
  0x17   : > { %456 = vmatprep.mubr.f32.mxu0 %v962_v0  ;;  %617 = vmatprep.mubr.f32.mxu1 %v962_v0 }
  0x18   : > { %281 = vperm.xlu1 %935, %v235_v15   ;;  %276 = vperm.xlu0 %934, %v234_v16  }
  0x1a   : > { %871 = vmatmul.mubr.msk.f32.gmra.mrb[2].mxu0 %vm328_vm1, %v211_v11  ;;  %889 = vmatmul.mubr.msk.f32.gmra.mrb[2].mxu1 %vm328_vm1, %v211_v11 }
  0x1b   : > { %462 = vmatprep.mubr.f32.mxu0 %v962_v0  ;;  %623 = vmatprep.mubr.f32.mxu1 %v962_v0 }
  0x1c   : > { %291 = vperm.xlu1 %935, %v237_v18   ;;  %286 = vperm.xlu0 %934, %v236_v19  }
  0x1e   : > { %872 = vmatmul.mubr.msk.f32.gmra.mrb[4].mxu0 %vm328_vm1, %v212_v14  ;;  %890 = vmatmul.mubr.msk.f32.gmra.mrb[4].mxu1 %vm328_vm1, %v212_v14 }
  0x1f   : > { %468 = vmatprep.mubr.f32.mxu0 %v962_v0  ;;  %629 = vmatprep.mubr.f32.mxu1 %v962_v0 }
  0x20   : > { %301 = vperm.xlu1 %935, %v239_v21   ;;  %296 = vperm.xlu0 %934, %v238_v22  }
  0x22   : > { %873 = vmatmul.mubr.msk.f32.gmra.mrb[6].mxu0 %vm328_vm1, %v213_v17  ;;  %891 = vmatmul.mubr.msk.f32.gmra.mrb[6].mxu1 %vm328_vm1, %v213_v17 }
  0x23   : > { %474 = vmatprep.mubr.f32.mxu0 %v962_v0  ;;  %635 = vmatprep.mubr.f32.mxu1 %v962_v0 }
  0x24   : > { %311 = vperm.xlu1 %935, %v241_v24   ;;  %306 = vperm.xlu0 %934, %v240_v25  }
  0x26   : > { %874 = vmatmul.mubr.msk.f32.gmra.mrb[8].mxu0 %vm328_vm1, %v214_v20  ;;  %892 = vmatmul.mubr.msk.f32.gmra.mrb[8].mxu1 %vm328_vm1, %v214_v20 }
  0x27   : > { %480 = vmatprep.mubr.f32.mxu0 %v962_v0  ;;  %641 = vmatprep.mubr.f32.mxu1 %v962_v0 }
  0x28   : > { %321 = vperm.xlu1 %935, %v243_v27   ;;  %316 = vperm.xlu0 %934, %v242_v28  }
  0x2a   : > { %875 = vmatmul.mubr.msk.f32.gmra.mrb[10].mxu0 %vm328_vm1, %v215_v23  ;;  %893 = vmatmul.mubr.msk.f32.gmra.mrb[10].mxu1 %vm328_vm1, %v215_v23 }
  0x2b   : > { %486 = vmatprep.mubr.f32.mxu0 %v962_v0  ;;  %647 = vmatprep.mubr.f32.mxu1 %v962_v0 }
  0x2e   : > { %876 = vmatmul.mubr.msk.f32.gmra.mrb[12].mxu0 %vm328_vm1, %v216_v26  ;;  %894 = vmatmul.mubr.msk.f32.gmra.mrb[12].mxu1 %vm328_vm1, %v216_v26 }
  0x2f   : > { %492 = vmatprep.mubr.f32.mxu0 %v962_v0  ;;  %653 = vmatprep.mubr.f32.mxu1 %v962_v0 }
  0x32   : > { %877 = vmatmul.mubr.msk.f32.gmra.mrb[14].mxu0 %vm328_vm1, %v217_v29  ;;  %895 = vmatmul.mubr.msk.f32.gmra.mrb[14].mxu1 %vm328_vm1, %v217_v29 }
  0x33   : > { %498 = vmatprep.mubr.f32.mxu0 %v962_v0  ;;  %659 = vmatprep.mubr.f32.mxu1 %v962_v0 }
  0x36   : > { %878 = vmatmul.mubr.msk.f32.gmra.mrb[16].mxu0 %vm328_vm1, %v218_v30  ;;  %896 = vmatmul.mubr.msk.f32.gmra.mrb[16].mxu1 %vm328_vm1, %v218_v30 }
  0x37   : > { %504 = vmatprep.mubr.f32.mxu0 %v962_v0  ;;  %665 = vmatprep.mubr.f32.mxu1 %v962_v0 }
  0x3a   : > { %879 = vmatmul.mubr.msk.f32.gmra.mrb[18].mxu0 %vm328_vm1, %v219_v31  ;;  %897 = vmatmul.mubr.msk.f32.gmra.mrb[18].mxu1 %vm328_vm1, %v219_v31 }
  0x3b   : > { %510 = vmatprep.mubr.f32.mxu0 %v962_v0  ;;  %671 = vmatprep.mubr.f32.mxu1 %v962_v0 }
  0x3e   : > { %880 = vmatmul.mubr.msk.f32.gmra.mrb[20].mxu0 %vm328_vm1, %v220_v32  ;;  %898 = vmatmul.mubr.msk.f32.gmra.mrb[20].mxu1 %vm328_vm1, %v220_v32 }
  0x3f   : > { %516 = vmatprep.mubr.f32.mxu0 %v962_v0  ;;  %677 = vmatprep.mubr.f32.mxu1 %v962_v0 }
  0x42   : > { %881 = vmatmul.mubr.msk.f32.gmra.mrb[22].mxu0 %vm328_vm1, %v221_v33  ;;  %899 = vmatmul.mubr.msk.f32.gmra.mrb[22].mxu1 %vm328_vm1, %v221_v33 }
  0x43   : > { %522 = vmatprep.mubr.f32.mxu0 %v962_v0  ;;  %683 = vmatprep.mubr.f32.mxu1 %v962_v0 }
  0x46   : > { %882 = vmatmul.mubr.msk.f32.gmra.mrb[24].mxu0 %vm328_vm1, %v222_v34  ;;  %900 = vmatmul.mubr.msk.f32.gmra.mrb[24].mxu1 %vm328_vm1, %v222_v34 }
  0x47   : > { %528 = vmatprep.mubr.f32.mxu0 %v962_v0  ;;  %689 = vmatprep.mubr.f32.mxu1 %v962_v0 }
  0x4a   : > { %883 = vmatmul.mubr.msk.f32.gmra.mrb[26].mxu0 %vm328_vm1, %v223_v35  ;;  %901 = vmatmul.mubr.msk.f32.gmra.mrb[26].mxu1 %vm328_vm1, %v223_v35 }
  0x4b   : > { %534 = vmatprep.mubr.f32.mxu0 %v962_v0  ;;  %695 = vmatprep.mubr.f32.mxu1 %v962_v0 }
  0x4e   : > { %884 = vmatmul.mubr.msk.f32.gmra.mrb[28].mxu0 %vm328_vm1, %v224_v36  ;;  %902 = vmatmul.mubr.msk.f32.gmra.mrb[28].mxu1 %vm328_vm1, %v224_v36 }
  0x4f   : > { %540 = vmatprep.mubr.f32.mxu0 %v962_v0  ;;  %701 = vmatprep.mubr.f32.mxu1 %v962_v0 }
  0x52   : > { %885 = vmatmul.mubr.msk.f32.gmra.mrb[30].mxu0 %vm328_vm1, %v225_v37  ;;  %903 = vmatmul.mubr.msk.f32.gmra.mrb[30].mxu1 %vm328_vm1, %v225_v37 }
  0x88   : > { %v247_v38 = vpop.permute.xlu0 %246  ;;  %v257_v48 = vpop.permute.xlu1 %256 }
  0x8c   : > { %v252_v47 = vpop.permute.xlu0 %251  ;;  %v262_v1 = vpop.permute.xlu1 %261 }
  0x90   : > { %v267_v10 = vpop.permute.xlu0 %266  ;;  %v272_v19 = vpop.permute.xlu1 %271 }
  0x97   : > { %v277_v28 = vpop.permute.xlu0 %276  ;;  %v282_v37 = vpop.permute.xlu1 %281 }
  0xe9   : > { %v452_v39 = vpop.f32.mrb[0].mxu0  ;;  %v613_v40 = vpop.f32.mrb[0].mxu1 }
  0xea   : > { %v453_v41 = vadd.f32 %v452_v39, %v247_v38  ;;  %v614_v42 = vadd.f32 %v613_v40, %v247_v38  ;;  %v454_v43 = vpop.f32.mrb[1].mxu0  ;;  %v615_v44 = vpop.f32.mrb[1].mxu1 }
  0xeb   : > { %v455_v45 = vadd.f32 %v454_v43, %v247_v38  ;;  %v616_v46 = vadd.f32 %v615_v44, %v247_v38 }
  0xec   : > { %708 = vst [vmem:[%s1172_s18] sm:$0xff] %v453_v41  ;;  %710 = vst [vmem:[%s1172_s18 + $0x10] sm:$0xff] %v614_v42 }
  0xed   : > { %709 = vst [vmem:[%s1172_s18 + $0x8] sm:$0xff] %v455_v45  ;;  %711 = vst [vmem:[%s1172_s18 + $0x18] sm:$0xff] %v616_v46  ;;  %v458_v49 = vpop.f32.mrb[2].mxu0  ;;  %v619_v50 = vpop.f32.mrb[2].mxu1 }
  0xee   : > { %v459_v51 = vadd.f32 %v458_v49, %v252_v47  ;;  %v620_v52 = vadd.f32 %v619_v50, %v252_v47  ;;  %v460_v53 = vpop.f32.mrb[3].mxu0  ;;  %v621_v54 = vpop.f32.mrb[3].mxu1 }
  0xef   : > { %v461_v55 = vadd.f32 %v460_v53, %v252_v47  ;;  %v622_v56 = vadd.f32 %v621_v54, %v252_v47  ;;  %v287_v46 = vpop.permute.xlu0 %286 }
  0xf0   : > { %712 = vst [vmem:[%s1172_s18 + $0x20] sm:$0xff] %v459_v51  ;;  %714 = vst [vmem:[%s1172_s18 + $0x30] sm:$0xff] %v620_v52 }
  0xf1   : > { %713 = vst [vmem:[%s1172_s18 + $0x28] sm:$0xff] %v461_v55  ;;  %715 = vst [vmem:[%s1172_s18 + $0x38] sm:$0xff] %v622_v56  ;;  %v464_v57 = vpop.f32.mrb[4].mxu0  ;;  %v625_v58 = vpop.f32.mrb[4].mxu1 }
  0xf2   : > { %v465_v59 = vadd.f32 %v464_v57, %v257_v48  ;;  %v626_v60 = vadd.f32 %v625_v58, %v257_v48  ;;  %v466_v61 = vpop.f32.mrb[5].mxu0  ;;  %v627_v62 = vpop.f32.mrb[5].mxu1 }
  0xf3   : > { %v467_v63 = vadd.f32 %v466_v61, %v257_v48  ;;  %v628_v0 = vadd.f32 %v627_v62, %v257_v48  ;;  %v292_v55 = vpop.permute.xlu1 %291 }
  0xf4   : > { %716 = vst [vmem:[%s1172_s18 + $0x40] sm:$0xff] %v465_v59  ;;  %718 = vst [vmem:[%s1172_s18 + $0x50] sm:$0xff] %v626_v60 }
  0xf5   : > { %717 = vst [vmem:[%s1172_s18 + $0x48] sm:$0xff] %v467_v63  ;;  %719 = vst [vmem:[%s1172_s18 + $0x58] sm:$0xff] %v628_v0  ;;  %v470_v2 = vpop.f32.mrb[6].mxu0  ;;  %v631_v3 = vpop.f32.mrb[6].mxu1 }
  0xf6   : > { %v471_v4 = vadd.f32 %v470_v2, %v262_v1  ;;  %v632_v5 = vadd.f32 %v631_v3, %v262_v1  ;;  %v472_v6 = vpop.f32.mrb[7].mxu0  ;;  %v633_v7 = vpop.f32.mrb[7].mxu1 }
  0xf7   : > { %v473_v8 = vadd.f32 %v472_v6, %v262_v1  ;;  %v634_v9 = vadd.f32 %v633_v7, %v262_v1  ;;  %v297_v0 = vpop.permute.xlu0 %296 }
  0xf8   : > { %720 = vst [vmem:[%s1172_s18 + $0x60] sm:$0xff] %v471_v4  ;;  %722 = vst [vmem:[%s1172_s18 + $0x70] sm:$0xff] %v632_v5 }
  0xf9   : > { %721 = vst [vmem:[%s1172_s18 + $0x68] sm:$0xff] %v473_v8  ;;  %723 = vst [vmem:[%s1172_s18 + $0x78] sm:$0xff] %v634_v9  ;;  %v476_v11 = vpop.f32.mrb[8].mxu0  ;;  %v637_v12 = vpop.f32.mrb[8].mxu1 }
  0xfa   : > { %v477_v13 = vadd.f32 %v476_v11, %v267_v10  ;;  %v638_v14 = vadd.f32 %v637_v12, %v267_v10  ;;  %v478_v15 = vpop.f32.mrb[9].mxu0  ;;  %v639_v16 = vpop.f32.mrb[9].mxu1 }
  0xfb   : > { %v479_v17 = vadd.f32 %v478_v15, %v267_v10  ;;  %v640_v18 = vadd.f32 %v639_v16, %v267_v10  ;;  %v302_v9 = vpop.permute.xlu1 %301 }
  0xfc   : > { %724 = vst [vmem:[%s1172_s18 + $0x80] sm:$0xff] %v477_v13  ;;  %726 = vst [vmem:[%s1172_s18 + $0x90] sm:$0xff] %v638_v14 }
  0xfd   : > { %725 = vst [vmem:[%s1172_s18 + $0x88] sm:$0xff] %v479_v17  ;;  %727 = vst [vmem:[%s1172_s18 + $0x98] sm:$0xff] %v640_v18  ;;  %v482_v20 = vpop.f32.mrb[10].mxu0  ;;  %v643_v21 = vpop.f32.mrb[10].mxu1 }
  0xfe   : > { %v483_v22 = vadd.f32 %v482_v20, %v272_v19  ;;  %v644_v23 = vadd.f32 %v643_v21, %v272_v19  ;;  %v484_v24 = vpop.f32.mrb[11].mxu0  ;;  %v645_v25 = vpop.f32.mrb[11].mxu1 }
  0xff   : > { %v485_v26 = vadd.f32 %v484_v24, %v272_v19  ;;  %v646_v27 = vadd.f32 %v645_v25, %v272_v19  ;;  %v307_v18 = vpop.permute.xlu0 %306 }
 0x100   : > { %728 = vst [vmem:[%s1172_s18 + $0xa0] sm:$0xff] %v483_v22  ;;  %730 = vst [vmem:[%s1172_s18 + $0xb0] sm:$0xff] %v644_v23 }
 0x101   : > { %729 = vst [vmem:[%s1172_s18 + $0xa8] sm:$0xff] %v485_v26  ;;  %731 = vst [vmem:[%s1172_s18 + $0xb8] sm:$0xff] %v646_v27  ;;  %v488_v29 = vpop.f32.mrb[12].mxu0  ;;  %v649_v30 = vpop.f32.mrb[12].mxu1 }
 0x102   : > { %v489_v31 = vadd.f32 %v488_v29, %v277_v28  ;;  %v650_v32 = vadd.f32 %v649_v30, %v277_v28  ;;  %v490_v33 = vpop.f32.mrb[13].mxu0  ;;  %v651_v34 = vpop.f32.mrb[13].mxu1 }
 0x103   : > { %v491_v35 = vadd.f32 %v490_v33, %v277_v28  ;;  %v652_v36 = vadd.f32 %v651_v34, %v277_v28  ;;  %v312_v27 = vpop.permute.xlu1 %311 }
 0x104   : > { %732 = vst [vmem:[%s1172_s18 + $0xc0] sm:$0xff] %v489_v31  ;;  %734 = vst [vmem:[%s1172_s18 + $0xd0] sm:$0xff] %v650_v32 }
 0x105   : > { %733 = vst [vmem:[%s1172_s18 + $0xc8] sm:$0xff] %v491_v35  ;;  %735 = vst [vmem:[%s1172_s18 + $0xd8] sm:$0xff] %v652_v36  ;;  %v494_v38 = vpop.f32.mrb[14].mxu0  ;;  %v655_v39 = vpop.f32.mrb[14].mxu1 }
 0x106   : > { %v495_v40 = vadd.f32 %v494_v38, %v282_v37  ;;  %v656_v41 = vadd.f32 %v655_v39, %v282_v37  ;;  %v496_v42 = vpop.f32.mrb[15].mxu0  ;;  %v657_v43 = vpop.f32.mrb[15].mxu1 }
 0x107   : > { %v497_v44 = vadd.f32 %v496_v42, %v282_v37  ;;  %v658_v45 = vadd.f32 %v657_v43, %v282_v37  ;;  %v317_v36 = vpop.permute.xlu0 %316 }
 0x108   : > { %736 = vst [vmem:[%s1172_s18 + $0xe0] sm:$0xff] %v495_v40  ;;  %738 = vst [vmem:[%s1172_s18 + $0xf0] sm:$0xff] %v656_v41 }
 0x109   : > { %737 = vst [vmem:[%s1172_s18 + $0xe8] sm:$0xff] %v497_v44  ;;  %739 = vst [vmem:[%s1172_s18 + $0xf8] sm:$0xff] %v658_v45  ;;  %v500_v47 = vpop.f32.mrb[16].mxu0  ;;  %v661_v48 = vpop.f32.mrb[16].mxu1 }
 0x10a   : > { %v501_v49 = vadd.f32 %v500_v47, %v287_v46  ;;  %v662_v50 = vadd.f32 %v661_v48, %v287_v46  ;;  %v502_v51 = vpop.f32.mrb[17].mxu0  ;;  %v663_v52 = vpop.f32.mrb[17].mxu1 }
 0x10b   : > { %v503_v53 = vadd.f32 %v502_v51, %v287_v46  ;;  %v664_v54 = vadd.f32 %v663_v52, %v287_v46  ;;  %v322_v45 = vpop.permute.xlu1 %321 }
 0x10c   : > { %740 = vst [vmem:[%s1172_s18 + $0x100] sm:$0xff] %v501_v49  ;;  %742 = vst [vmem:[%s1172_s18 + $0x110] sm:$0xff] %v662_v50 }
 0x10d   : > { %741 = vst [vmem:[%s1172_s18 + $0x108] sm:$0xff] %v503_v53  ;;  %743 = vst [vmem:[%s1172_s18 + $0x118] sm:$0xff] %v664_v54  ;;  %v506_v56 = vpop.f32.mrb[18].mxu0  ;;  %v667_v57 = vpop.f32.mrb[18].mxu1 }
 0x10e   : > { %v507_v58 = vadd.f32 %v506_v56, %v292_v55  ;;  %v668_v59 = vadd.f32 %v667_v57, %v292_v55  ;;  %v508_v60 = vpop.f32.mrb[19].mxu0  ;;  %v669_v61 = vpop.f32.mrb[19].mxu1 }
 0x10f   : > { %v509_v62 = vadd.f32 %v508_v60, %v292_v55  ;;  %v670_v63 = vadd.f32 %v669_v61, %v292_v55 }
 0x110   : > { %744 = vst [vmem:[%s1172_s18 + $0x120] sm:$0xff] %v507_v58  ;;  %746 = vst [vmem:[%s1172_s18 + $0x130] sm:$0xff] %v668_v59 }
 0x111   : > { %745 = vst [vmem:[%s1172_s18 + $0x128] sm:$0xff] %v509_v62  ;;  %747 = vst [vmem:[%s1172_s18 + $0x138] sm:$0xff] %v670_v63  ;;  %v512_v1 = vpop.f32.mrb[20].mxu0  ;;  %v673_v2 = vpop.f32.mrb[20].mxu1 }
 0x112   : > { %v513_v3 = vadd.f32 %v512_v1, %v297_v0  ;;  %v674_v4 = vadd.f32 %v673_v2, %v297_v0  ;;  %v514_v5 = vpop.f32.mrb[21].mxu0  ;;  %v675_v6 = vpop.f32.mrb[21].mxu1 }
 0x113   : > { %v515_v7 = vadd.f32 %v514_v5, %v297_v0  ;;  %v676_v8 = vadd.f32 %v675_v6, %v297_v0 }
 0x114   : > { %748 = vst [vmem:[%s1172_s18 + $0x140] sm:$0xff] %v513_v3  ;;  %750 = vst [vmem:[%s1172_s18 + $0x150] sm:$0xff] %v674_v4 }
 0x115   : > { %749 = vst [vmem:[%s1172_s18 + $0x148] sm:$0xff] %v515_v7  ;;  %751 = vst [vmem:[%s1172_s18 + $0x158] sm:$0xff] %v676_v8  ;;  %v518_v10 = vpop.f32.mrb[22].mxu0  ;;  %v679_v11 = vpop.f32.mrb[22].mxu1 }
 0x116   : > { %v519_v12 = vadd.f32 %v518_v10, %v302_v9  ;;  %v680_v13 = vadd.f32 %v679_v11, %v302_v9  ;;  %v520_v14 = vpop.f32.mrb[23].mxu0  ;;  %v681_v15 = vpop.f32.mrb[23].mxu1 }
 0x117   : > { %v521_v16 = vadd.f32 %v520_v14, %v302_v9  ;;  %v682_v17 = vadd.f32 %v681_v15, %v302_v9 }
 0x118   : > { %752 = vst [vmem:[%s1172_s18 + $0x160] sm:$0xff] %v519_v12  ;;  %754 = vst [vmem:[%s1172_s18 + $0x170] sm:$0xff] %v680_v13 }
 0x119   : > { %753 = vst [vmem:[%s1172_s18 + $0x168] sm:$0xff] %v521_v16  ;;  %755 = vst [vmem:[%s1172_s18 + $0x178] sm:$0xff] %v682_v17  ;;  %v524_v19 = vpop.f32.mrb[24].mxu0  ;;  %v685_v20 = vpop.f32.mrb[24].mxu1 }
 0x11a   : > { %v525_v21 = vadd.f32 %v524_v19, %v307_v18  ;;  %v686_v22 = vadd.f32 %v685_v20, %v307_v18  ;;  %v526_v23 = vpop.f32.mrb[25].mxu0  ;;  %v687_v24 = vpop.f32.mrb[25].mxu1 }
 0x11b   : > { %v527_v25 = vadd.f32 %v526_v23, %v307_v18  ;;  %v688_v26 = vadd.f32 %v687_v24, %v307_v18 }
 0x11c   : > { %756 = vst [vmem:[%s1172_s18 + $0x180] sm:$0xff] %v525_v21  ;;  %758 = vst [vmem:[%s1172_s18 + $0x190] sm:$0xff] %v686_v22 }
 0x11d   : > { %757 = vst [vmem:[%s1172_s18 + $0x188] sm:$0xff] %v527_v25  ;;  %759 = vst [vmem:[%s1172_s18 + $0x198] sm:$0xff] %v688_v26  ;;  %v530_v28 = vpop.f32.mrb[26].mxu0  ;;  %v691_v29 = vpop.f32.mrb[26].mxu1 }
 0x11e   : > { %v531_v30 = vadd.f32 %v530_v28, %v312_v27  ;;  %v692_v31 = vadd.f32 %v691_v29, %v312_v27  ;;  %v532_v32 = vpop.f32.mrb[27].mxu0  ;;  %v693_v33 = vpop.f32.mrb[27].mxu1 }
 0x11f   : > { %v533_v34 = vadd.f32 %v532_v32, %v312_v27  ;;  %v694_v35 = vadd.f32 %v693_v33, %v312_v27 }
 0x120   : > { %760 = vst [vmem:[%s1172_s18 + $0x1a0] sm:$0xff] %v531_v30  ;;  %762 = vst [vmem:[%s1172_s18 + $0x1b0] sm:$0xff] %v692_v31 }
 0x121   : > { %761 = vst [vmem:[%s1172_s18 + $0x1a8] sm:$0xff] %v533_v34  ;;  %763 = vst [vmem:[%s1172_s18 + $0x1b8] sm:$0xff] %v694_v35  ;;  %v536_v37 = vpop.f32.mrb[28].mxu0  ;;  %v697_v38 = vpop.f32.mrb[28].mxu1 }
 0x122   : > { %v537_v39 = vadd.f32 %v536_v37, %v317_v36  ;;  %v698_v40 = vadd.f32 %v697_v38, %v317_v36  ;;  %v538_v41 = vpop.f32.mrb[29].mxu0  ;;  %v699_v42 = vpop.f32.mrb[29].mxu1 }
 0x123   : > { %v539_v43 = vadd.f32 %v538_v41, %v317_v36  ;;  %v700_v44 = vadd.f32 %v699_v42, %v317_v36 }
 0x124   : > { %764 = vst [vmem:[%s1172_s18 + $0x1c0] sm:$0xff] %v537_v39  ;;  %766 = vst [vmem:[%s1172_s18 + $0x1d0] sm:$0xff] %v698_v40 }
 0x125   : > { %765 = vst [vmem:[%s1172_s18 + $0x1c8] sm:$0xff] %v539_v43  ;;  %767 = vst [vmem:[%s1172_s18 + $0x1d8] sm:$0xff] %v700_v44  ;;  %v542_v46 = vpop.f32.mrb[30].mxu0  ;;  %v703_v47 = vpop.f32.mrb[30].mxu1 }
 0x126   : > { %v543_v48 = vadd.f32 %v542_v46, %v322_v45  ;;  %v704_v49 = vadd.f32 %v703_v47, %v322_v45  ;;  %v544_v50 = vpop.f32.mrb[31].mxu0  ;;  %v705_v51 = vpop.f32.mrb[31].mxu1 }
 0x127   : > { %v545_v52 = vadd.f32 %v544_v50, %v322_v45  ;;  %v706_v53 = vadd.f32 %v705_v51, %v322_v45 }
 0x128   : > { %768 = vst [vmem:[%s1172_s18 + $0x1e0] sm:$0xff] %v543_v48  ;;  %770 = vst [vmem:[%s1172_s18 + $0x1f0] sm:$0xff] %v704_v49 }
 0x129   : > { %769 = vst [vmem:[%s1172_s18 + $0x1e8] sm:$0xff] %v545_v52  ;;  %771 = vst [vmem:[%s1172_s18 + $0x1f8] sm:$0xff] %v706_v53 }
 0x12a PF: > { %s13_s14 = sadd.s32 1, %s960_s14   ;;  %s1251_s12 = smov %s956_s13 }
 0x12b   : > { %p10_p5 = scmp.ge.s32.totalorder %s13_s14, 4   ;;  %s1252_s13 = smov %s1254_s15 }
 0x12d   :  { %12 = sbr.rel (!%p10_p5) target bundleno = 2 (0x2), region = 62 }

</bundles_post_ra>
